<compile_context>
chip_gen: v7x
topology: tpu7x:2x2x1
jax: 0.10.0
libtpu: 0.0.40
codegen_flags: <defaults>
</compile_context>

<pallas_src>
import functools

import jax
import jax.numpy as jnp
import numpy as np
from jax import lax
from jax.experimental import pallas as pl
from jax.experimental.pallas import tpu as pltpu

KSIZE = 5
PAD = 2
LANE = 128
_SQRT_HALF = 0.7071067811865476


def _round_up(n, m):
    return ((n + m - 1) // m) * m


@functools.lru_cache(maxsize=None)
def _roll_matches_jnp():
    """True iff pltpu.roll follows jnp.roll's convention (out[i] = x[i - shift]).

    Tiny cached probe kernel; it guards the conv-tap indexing below so the
    depthwise taps stay correct under either rotate convention.
    """
    def probe(x_ref, o_ref):
        o_ref[...] = pltpu.roll(x_ref[...], 1, axis=0)

    x = lax.broadcasted_iota(jnp.float32, (8, LANE), 0)
    y = pl.pallas_call(
        probe, out_shape=jax.ShapeDtypeStruct((8, LANE), jnp.float32))(x)
    return bool(y[1, 0] == 0.0)


def _gelu_exact(x):
    """Exact (erf-based) GELU.

    erf is evaluated with Abramowitz-Stegun 7.1.26 (max abs error ~1.5e-7,
    i.e. far below the bf16 matmul noise) so we never depend on a lax.erf
    lowering rule inside Mosaic -- only exp / div / mul / select are used.
    """
    z = x * _SQRT_HALF
    az = jnp.abs(z)
    t = 1.0 / (1.0 + 0.3275911 * az)
    poly = ((((1.061405429 * t - 1.453152027) * t + 1.421413741) * t
             - 0.284496736) * t + 0.254829592) * t
    erf_abs = 1.0 - poly * jnp.exp(-az * az)
    erf_z = jnp.where(z < 0.0, -erf_abs, erf_abs)
    return 0.5 * x * (1.0 + erf_z)


def convnext_kernel(xpad_hbm, dww_ref, dwb_ref, g_ref, bt_ref,
                    w1_ref, b1_ref, w2_ref, b2_ref,
                    out_ref, xbuf, sem, *, true_c, jnp_roll):
    """One (batch, row-tile) grid step: dw-conv -> LN -> MLP -> +residual."""
    TH, W, Cp = out_ref.shape
    THP, Wp, _ = xbuf.shape
    N = THP * Wp

    b = pl.program_id(0)
    i = pl.program_id(1)

    # ---- fetch the (TH+4)-row halo window of the padded activation --------
    # Self-contained synchronous window DMA: no cross-step state, so both
    # grid axes can be sharded/pipelined arbitrarily.
    cp = pltpu.make_async_copy(xpad_hbm.at[b, pl.ds(i * TH, THP)], xbuf, sem)
    cp.start()

    # ---- per-channel params (independent of the window DMA -> overlap) ----
    dwb = dwb_ref[0, :]
    gamma = g_ref[0, :]
    beta = bt_ref[0, :]
    b1 = b1_ref[0, :]
    b2 = b2_ref[0, :]

    cp.wait()
    # Flatten rows: flat row r = h * Wp + w  (layout-trivial: Wp % 8 == 0).
    xp = xbuf[...].reshape(N, Cp)                       # f32

    # ---- depthwise 5x5 conv -------------------------------------------------
    # One XLU sublane rotation per kw tap (rotated row r holds xp[r + kw]);
    # each rotated window is reused across the 5 kh taps via aligned slices
    # (offset kh*Wp is a multiple of 8 -> no relayout).  Roll wrap-around and
    # flat row-boundary spill only touch the padded columns we later drop.
    acc = jnp.zeros((TH * Wp, Cp), jnp.float32)
    resid = None
    for kw in range(KSIZE):
        if kw == 0:
            r_kw = xp
        else:
            shift = (N - kw) % N if jnp_roll else kw
            r_kw = pltpu.roll(xp, shift, axis=0)
        if kw == PAD:
            # Residual tile == original (unpadded) activation: xp[h+2, w+2].
            resid = (r_kw[PAD * Wp:(PAD + TH) * Wp, :]
                     .reshape(TH, Wp, Cp)[:, :W, :])
        for kh in range(KSIZE):
            acc = acc + (r_kw[kh * Wp:(kh + TH) * Wp, :]
                         * dww_ref[kh * KSIZE + kw, :])

    y = acc.reshape(TH, Wp, Cp)[:, :W, :] + dwb         # drop halo columns
    z0 = y.reshape(TH * W, Cp)

    # ---- LayerNorm over the TRUE C channels (one-pass moments) ------------
    # Padded channel lanes are exactly zero, so plain sums are safe as long as
    # we divide by true_c (not the padded lane count).
    inv_c = 1.0 / float(true_c)
    s1 = jnp.sum(z0, axis=-1, keepdims=True)
    s2 = jnp.sum(z0 * z0, axis=-1, keepdims=True)
    mu = s1 * inv_c
    var = jnp.maximum(s2 * inv_c - mu * mu, 0.0)
    yn = (z0 - mu) * lax.rsqrt(var + 1e-5)
    yn = yn * gamma + beta                              # padded lanes -> 0 again

    # ---- MLP: Linear(C,4C) -> exact GELU -> Linear(4C,C) (bf16 on the MXU) -
    h = jnp.dot(yn.astype(jnp.bfloat16), w1_ref[...],
                preferred_element_type=jnp.float32) + b1
    h = _gelu_exact(h)
    o = jnp.dot(h.astype(jnp.bfloat16), w2_ref[...],
                preferred_element_type=jnp.float32) + b2

    # ---- stochastic depth (eval: identity) + residual ----------------------
    # TODO(synk): training-mode StochasticDepth(0.1,'row') needs a PRNG row mask.
    out_ref[...] = o.reshape(TH, W, Cp) + resid


def _pick_tile_h(H, W, Cp, Hd):
    """Largest row-tile dividing H whose per-step working set (halo window +
    MLP intermediates) fits a v7x-safe budget, preferring >=2 tiles so the
    grid has pipeline depth and work for both v7x TensorCores."""
    Wp = _round_up(W + 2 * PAD, 8)
    budget = 12 * 1024 * 1024
    cost = lambda th: ((th + 2 * PAD) * Wp * Cp + 3 * th * W * Hd) * 4
    divs = [d for d in range(1, H + 1) if H % d == 0]
    ok = [d for d in divs if cost(d) <= budget] or [min(divs, key=cost)]
    multi = [d for d in ok if H // d >= 2]
    return max(multi) if multi else max(ok)


def convnext_block(x_nchw, params):
    """x_nchw: (B, C, H, W) float32.  Returns (B, C, H, W) float32."""
    B, C, H, W = x_nchw.shape
    Cp = _round_up(C, LANE)                       # lane-dense channel dim
    Hd = _round_up(4 * C, LANE)                   # lane-dense MLP hidden dim
    Wp = _round_up(W + 2 * PAD, 8)                # sublane-aligned padded width
    TH = _pick_tile_h(H, W, Cp, Hd)
    nH = H // TH
    THP = TH + 2 * PAD

    # NCHW -> NHWC; ONE pad pass covers both the 2-px conv halo and the zero
    # channel padding (channels are the lane axis).
    x = jnp.transpose(x_nchw, (0, 2, 3, 1))
    xpad = jnp.pad(x, ((0, 0), (PAD, PAD), (PAD, Wp - W - PAD), (0, Cp - C)))

    padc = lambda a, n: jnp.pad(a, [(0, 0)] * (a.ndim - 1) + [(0, n - a.shape[-1])])
    dww = padc(params["dw_w"].reshape(C, KSIZE * KSIZE).T, Cp)         # (25, Cp)
    dwb = padc(params["dw_b"].reshape(1, C), Cp)
    g = padc(params["ln_g"].reshape(1, C), Cp)
    bt = padc(params["ln_b"].reshape(1, C), Cp)
    w1 = jnp.pad(params["fc1_w"].T,
                 ((0, Cp - C), (0, Hd - 4 * C))).astype(jnp.bfloat16)  # (Cp, Hd)
    b1 = padc(params["fc1_b"].reshape(1, 4 * C), Hd)
    w2 = jnp.pad(params["fc2_w"].T,
                 ((0, Hd - 4 * C), (0, Cp - C))).astype(jnp.bfloat16)  # (Hd, Cp)
    b2 = padc(params["fc2_b"].reshape(1, C), Cp)

    kernel = functools.partial(convnext_kernel, true_c=C,
                               jnp_roll=_roll_matches_jnp())
    rep = lambda shape: pl.BlockSpec(shape, lambda b_, i_: (0, 0))

    out = pl.pallas_call(
        kernel,
        out_shape=jax.ShapeDtypeStruct((B, H, W, Cp), jnp.float32),
        grid=(B, nH),
        in_specs=[
            pl.BlockSpec(memory_space=pl.ANY),      # padded activation (HBM)
            rep((KSIZE * KSIZE, Cp)),               # depthwise weights
            rep((1, Cp)), rep((1, Cp)), rep((1, Cp)),   # dw bias, LN gamma/beta
            rep((Cp, Hd)), rep((1, Hd)),            # fc1 (bf16), fc1 bias
            rep((Hd, Cp)), rep((1, Cp)),            # fc2 (bf16), fc2 bias
        ],
        out_specs=pl.BlockSpec((None, TH, W, Cp), lambda b_, i_: (b_, i_, 0, 0)),
        scratch_shapes=[pltpu.VMEM((THP, Wp, Cp), jnp.float32),
                        pltpu.SemaphoreType.DMA],
        compiler_params=pltpu.CompilerParams(
            dimension_semantics=("parallel", "parallel"),
            vmem_limit_bytes=48 * 1024 * 1024),
    )(xpad, dww, dwb, g, bt, w1, b1, w2, b2)

    return jnp.transpose(out[..., :C], (0, 3, 1, 2))   # drop pad, back to NCHW


def reference(x_nchw, params):
    """Pure-JAX f32 reference (eval mode) for validation."""
    B, C, H, W = x_nchw.shape
    y = lax.conv_general_dilated(
        x_nchw, params["dw_w"], window_strides=(1, 1),
        padding=((PAD, PAD), (PAD, PAD)),
        dimension_numbers=("NCHW", "OIHW", "NCHW"), feature_group_count=C)
    y = y + params["dw_b"][None, :, None, None]
    y = jnp.transpose(y, (0, 2, 3, 1))                  # NHWC
    mu = jnp.mean(y, axis=-1, keepdims=True)
    var = jnp.mean((y - mu) ** 2, axis=-1, keepdims=True)
    y = (y - mu) / jnp.sqrt(var + 1e-5) * params["ln_g"] + params["ln_b"]
    y = y @ params["fc1_w"].T + params["fc1_b"]
    y = jax.nn.gelu(y, approximate=False)
    y = y @ params["fc2_w"].T + params["fc2_b"]
    y = jnp.transpose(y, (0, 3, 1, 2))
    return y + x_nchw


def init_params(key, C):
    ks = jax.random.split(key, 6)
    return {
        "dw_w": 0.1 * jax.random.normal(ks[0], (C, 1, KSIZE, KSIZE), jnp.float32),
        "dw_b": 0.05 * jax.random.normal(ks[1], (C,), jnp.float32),
        "ln_g": jnp.ones((C,), jnp.float32),
        "ln_b": jnp.zeros((C,), jnp.float32),
        "fc1_w": 0.1 * jax.random.normal(ks[2], (4 * C, C), jnp.float32),
        "fc1_b": 0.05 * jax.random.normal(ks[3], (4 * C,), jnp.float32),
        "fc2_w": 0.1 * jax.random.normal(ks[4], (C, 4 * C), jnp.float32),
        "fc2_b": 0.05 * jax.random.normal(ks[5], (C,), jnp.float32),
    }


if __name__ == "__main__":
    key = jax.random.PRNGKey(0)
    k_x, k_p = jax.random.split(key)
    B, C, H, W = 2, 4, 16, 16
    x = jax.random.normal(k_x, (B, C, H, W), jnp.float32)
    params = init_params(k_p, C)

    out = jax.block_until_ready(convnext_block(x, params))
    ref = jax.block_until_ready(reference(x, params))

    # MLP matmuls use bf16 MXU operands (deliberate perf choice); compare
    # against the pure-f32 reference with a correspondingly relaxed tolerance.
    np.testing.assert_allclose(np.asarray(out), np.asarray(ref),
                               atol=4e-2, rtol=4e-2)
    print("KERNEL_OK")
</pallas_src>

<mosaic_0001>
module attributes {stable_mosaic.version = 11 : i64} {
  func.func @probe(%arg0: memref<8x128xf32, #tpu.memory_space<vmem>>, %arg1: memref<8x128xf32, #tpu.memory_space<vmem>>) attributes {dimension_semantics = [], scalar_prefetch = 0 : i64, scratch_operands = 0 : i64, tpu.core_type = #tpu.core_type<tc>} {
    %c0 = arith.constant 0 : index
    %c0_0 = arith.constant 0 : index
    %0 = vector.load %arg0[%c0, %c0_0] : memref<8x128xf32, #tpu.memory_space<vmem>>, vector<8x128xf32>
    %c1_i32 = arith.constant 1 : i32
    %1 = tpu.dynamic_rotate %0 by %c1_i32 dim 0 : vector<8x128xf32>, i32 -> vector<8x128xf32>
    %c0_1 = arith.constant 0 : index
    %c0_2 = arith.constant 0 : index
    %2 = vector.load %arg1[%c0_1, %c0_2] : memref<8x128xf32, #tpu.memory_space<vmem>>, vector<8x128xf32>
    tpu.vector_store %arg1[%c0_1, %c0_2], %1 {strides = array<i32>} : memref<8x128xf32, #tpu.memory_space<vmem>>, vector<8x128xf32>,
    return
  }
}

</mosaic_0001>

<bundles_post_ra>
// kernel: tpu_custom_call.1
= control target key start
LH: loop header
LB: loop body
LE: loop exit
PB: predicated region body
PF: predicated region fallthrough
CT: control target
= control target key end

     0   :  { %6 = vsyncpa [#allocation3], 0  ;;  %s125_s0 = inlined_call_operand.hbm [shape: f32[8,128], index: 0, kind: input, shape index: {}]   ;;  %s126_s1 = inlined_call_operand.hbm [shape: f32[8,128], index: 1, kind: output, shape index: {}]  }
   0x1   :  { %7 = vsyncpa [#allocation4], 0  ;;  %s89_s6 = smov [#allocation2]   ;;  %s41_s10 = scalar_lea.hbm %s125_s0, 128 }
   0x2   :  { %s14_s7 = sshll.u32 %s89_s6, 4  ;;  %p42_p0 = scmp.ne.s32.totalorder %s125_s0, %s41_s10  ;;  %s15_s7 = int_to_ptr.vmem [resolvable:$true] %s14_s7 }
   0x3   :  { %p45_p1 = scmp.lt.u32.totalorder %s41_s10, %s125_s0 }
   0x5   :  { %p47_p2 = pnand %p45_p1, %p42_p0 }
   0x7   :  { %50 = shalt.err (!%p47_p2)
}
   0x8   :  { %s51_s15 = scalar_lea.vmem %s15_s7, 128  ;;  %p56_p4 = scmp.lt.s32.totalorder %s15_s7, %s15_s7 }
   0x9   :  { %p52_p3 = scmp.ne.s32.totalorder %s15_s7, %s51_s15  ;;  %p57_p5 = scmp.lt.s32.totalorder %s51_s15, %s51_s15 }
   0xb   :  { %p58_p6 = por %p57_p5, %p56_p4 }
   0xd   :  { %p59_p7 = pnand %p58_p6, %p52_p3 }
   0xf   :  { %62 = shalt.err (!%p59_p7)
}
  0x10   :  { %17 = dma.hbm_to_vmem [thread:$0]  %s125_s0, 128, %s15_s7, [#allocation3]  }
  0x11   :  { %85 = dma.done.wait [#allocation3], 128  }
  0x12   :  { %86 = vsyncadd [#allocation3], 4294967168  ;;  %s90_s18 = smov [#allocation5]   ;;  %v21_v0 = vld [vmem:[#allocation2] sm:$0xff] }
  0x13   :  { %s30_s19 = sshll.u32 %s90_s18, 4  ;;  %v22_v1 = vrot.slane %v21_v0, 7  ;;  %s31_s19 = int_to_ptr.vmem [resolvable:$true] %s30_s19 }
  0x14   :  { %s63_s20 = scalar_lea.vmem %s31_s19, 128  ;;  %p68_p9 = scmp.lt.s32.totalorder %s31_s19, %s31_s19 }
  0x15   :  { %23 = vst [vmem:[#allocation5] sm:$0xff] %v22_v1  ;;  %p64_p8 = scmp.ne.s32.totalorder %s31_s19, %s63_s20  ;;  %p69_p10 = scmp.lt.s32.totalorder %s63_s20, %s63_s20 }
  0x17   :  { %p70_p11 = por %p69_p10, %p68_p9 }
  0x19   :  { %p71_p12 = pnand %p70_p11, %p64_p8 }
  0x1b   :  { %74 = shalt.err (!%p71_p12)
}
  0x1c   :  { %s75_s23 = scalar_lea.hbm %s126_s1, 128 }
  0x1d   :  { %p76_p13 = scmp.ne.s32.totalorder %s126_s1, %s75_s23  ;;  %p79_p0 = scmp.lt.u32.totalorder %s75_s23, %s126_s1 }
  0x1f   :  { %p81_p1 = pnand %p79_p0, %p76_p13 }
  0x21   :  { %84 = shalt.err (!%p81_p1)
}
  0x22   :  { %33 = dma.vmem_to_hbm [thread:$0]  %s31_s19, 128, %s126_s1, [#allocation4]  }
  0x23   :  { %87 = dma.done.wait [#allocation4], 128  }
  0x24   :  { %88 = vsyncadd [#allocation4], 4294967168 }
  0x25   :  { %37 = vsyncpa [#allocation3], 1 }
  0x26   :  { %38 = vsyncpa [#allocation4], 1 }

</bundles_post_ra>
